<compile_context>
chip_gen: v7x
topology: tpu7x:2x2x1
jax: 0.10.0
libtpu: 0.0.40
codegen_flags: <defaults>
</compile_context>

<pallas_src>
import functools

import jax
import jax.numpy as jnp
from jax.experimental import pallas as pl
from jax.experimental.pallas import tpu as pltpu


# ----------------------------------------------------------------------------
# Phase 1: fused projection  z_all = hn @ [W_fc^T | W_fc^T a_src | W_fc^T a_dst]
# One MXU pass per row tile; outputs are laid out for zero per-step relayout
# in phase 2.
# ----------------------------------------------------------------------------
def gat_project_kernel(hn_ref, w_all_ref, z_ref, s_src_ref, s_dst_ref, *, out_dim):
    hn_bf = hn_ref[...].astype(jnp.bfloat16)                 # cast after DMA (f32 read once)
    z_all = jnp.dot(hn_bf, w_all_ref[...], preferred_element_type=jnp.float32)
    z_ref[...] = z_all[:, :out_dim].astype(jnp.bfloat16)     # [TN, out_dim] bf16
    # Column -> row transpose of the src score happens ONCE here (per phase-1
    # tile), instead of once per phase-2 grid step.
    s_src_ref[...] = z_all[:, out_dim:out_dim + 1].T         # [1, TN] f32 (lane-major)
    s_dst_ref[...] = z_all[:, out_dim + 1:out_dim + 2]       # [TN, 1] f32 (column)


# ----------------------------------------------------------------------------
# Phase 2: masked softmax over incoming edges + aggregation, tiled over dst rows
# ----------------------------------------------------------------------------
def gat_attend_kernel(z_ref, s_src_ref, s_dst_ref, adj_ref, h_ref, *, tile_dst):
    i = pl.program_id(0)
    d0 = pl.multiple_of(i * tile_dst, tile_dst)

    # e_raw[dst, src] = s_dst[dst] + s_src[src]; both broadcasts are native
    # (lane-broadcast of a resident column slice + sublane-broadcast of a row).
    s_dst = s_dst_ref[pl.ds(d0, tile_dst), :]                # [TD, 1] resident slice
    raw = s_dst + s_src_ref[...]                             # [TD,1]+[1,N] -> [TD,N]

    # Adjacency tile arrives as f32 and is compared directly (no dtype unpack).
    mask = adj_ref[...] > 0.0
    e = jnp.where(mask,
                  jnp.where(raw > 0.0, raw, jnp.float32(0.01) * raw),
                  jnp.float32(-1e30))

    # softmax over incoming edges (src axis, lanes).
    m = jnp.max(e, axis=-1, keepdims=True)
    p = jnp.exp(e - m)
    inv = pl.reciprocal(jnp.sum(p, axis=-1, keepdims=True), approx=True)
    alpha = (p * inv).astype(jnp.bfloat16)

    # h[dst] = sum_src alpha[dst, src] * z[src]   (bf16 operands, f32 accumulate)
    h_ref[...] = jnp.dot(alpha, z_ref[...], preferred_element_type=jnp.float32)


def gat_forward(hn, wfc, attn_w, adj, *, tile_dst=128, tile_n=256):
    """hn: [N, in_dim] f32, wfc: [out_dim, in_dim] f32, attn_w: [1, 2*out_dim] f32,
    adj: [N_dst, N_src] (nonzero = edge; every dst must have >=1 incoming edge)."""
    N, in_dim = hn.shape
    out_dim = wfc.shape[0]

    tile_dst = min(tile_dst, N)
    tile_n = min(tile_n, N)
    assert N % tile_dst == 0 and (tile_dst == N or tile_dst % 8 == 0), \
        "tile_dst must divide N and be a multiple of 8 (or equal N)"
    assert N % tile_n == 0 and (tile_n == N or tile_n % 128 == 0), \
        "tile_n must divide N and be a multiple of 128 (or equal N)"

    # ---- weight prep (tiny, layout plumbing done once in the wrapper) ----
    wfc_t = wfc.T.astype(jnp.float32)                          # [in_dim, out_dim]
    a_src = attn_w[0, :out_dim].reshape(out_dim, 1)
    a_dst = attn_w[0, out_dim:].reshape(out_dim, 1)
    # Fold the attention projections into the feature matmul.
    w_all = jnp.concatenate([wfc_t, wfc_t @ a_src, wfc_t @ a_dst], axis=1)
    w_all = w_all.astype(jnp.bfloat16)                         # [in_dim, out_dim+2]

    cparams = pltpu.CompilerParams(
        dimension_semantics=("parallel",),
        vmem_limit_bytes=48 * 1024 * 1024)                     # above 16/32 MiB defaults

    # ---- phase 1: projection, gridded over row tiles ----
    z, s_src, s_dst = pl.pallas_call(
        functools.partial(gat_project_kernel, out_dim=out_dim),
        out_shape=(
            jax.ShapeDtypeStruct((N, out_dim), jnp.bfloat16),
            jax.ShapeDtypeStruct((1, N), jnp.float32),
            jax.ShapeDtypeStruct((N, 1), jnp.float32),
        ),
        grid=(N // tile_n,),
        in_specs=[
            pl.BlockSpec((tile_n, in_dim), lambda i: (i, 0)),          # hn row tile (f32)
            pl.BlockSpec((in_dim, out_dim + 2), lambda i: (0, 0)),     # fused weights (resident)
        ],
        out_specs=(
            pl.BlockSpec((tile_n, out_dim), lambda i: (i, 0)),         # z
            pl.BlockSpec((1, tile_n), lambda i: (0, i)),               # s_src (lane-major)
            pl.BlockSpec((tile_n, 1), lambda i: (i, 0)),               # s_dst (column)
        ),
        compiler_params=cparams,
    )(hn, w_all)

    # ---- phase 2: attention, grid over destination-node tiles ----
    h = pl.pallas_call(
        functools.partial(gat_attend_kernel, tile_dst=tile_dst),
        out_shape=jax.ShapeDtypeStruct((N, out_dim), jnp.float32),
        grid=(N // tile_dst,),
        in_specs=[
            pl.BlockSpec((N, out_dim), lambda i: (0, 0)),      # z        (resident, bf16)
            pl.BlockSpec((1, N), lambda i: (0, 0)),            # s_src    (resident row)
            pl.BlockSpec((N, 1), lambda i: (0, 0)),            # s_dst    (resident column)
            pl.BlockSpec((tile_dst, N), lambda i: (i, 0)),     # adj tile (f32, per step)
        ],
        out_specs=pl.BlockSpec((tile_dst, out_dim), lambda i: (i, 0)),
        compiler_params=cparams,
    )(z, s_src, s_dst, adj.astype(jnp.float32))
    return h


def gat_reference(hn, wfc, attn_w, adj):
    """Pure-JAX reference mirroring the kernel's bf16 matmul operands."""
    out_dim = wfc.shape[0]
    wfc_t = wfc.T
    a_src = attn_w[0, :out_dim].reshape(-1, 1)
    a_dst = attn_w[0, out_dim:].reshape(-1, 1)
    w_all = jnp.concatenate([wfc_t, wfc_t @ a_src, wfc_t @ a_dst], axis=1)
    z_all = jnp.dot(hn.astype(jnp.bfloat16), w_all.astype(jnp.bfloat16),
                    preferred_element_type=jnp.float32)
    z = z_all[:, :out_dim].astype(jnp.bfloat16)
    raw = z_all[:, out_dim + 1][:, None] + z_all[:, out_dim][None, :]
    e = jnp.where(adj > 0, jnp.where(raw > 0, raw, 0.01 * raw), -1e30)
    alpha = jax.nn.softmax(e, axis=-1).astype(jnp.bfloat16)
    return jnp.dot(alpha, z, preferred_element_type=jnp.float32)


if __name__ == "__main__":
    N, in_dim, out_dim = 64, 16, 32

    key = jax.random.PRNGKey(0)
    k_hn, k_wfc, k_attn, k_adj = jax.random.split(key, 4)

    # Deterministic xavier_normal_ with gain = calculate_gain('relu') = sqrt(2)
    gain = jnp.sqrt(2.0)
    std_fc = gain * jnp.sqrt(2.0 / (in_dim + out_dim))
    std_attn = gain * jnp.sqrt(2.0 / (2 * out_dim + 1))
    wfc = std_fc * jax.random.normal(k_wfc, (out_dim, in_dim), jnp.float32)
    attn_w = std_attn * jax.random.normal(k_attn, (1, 2 * out_dim), jnp.float32)

    # Node features
    hn = jax.random.normal(k_hn, (N, in_dim), jnp.float32)

    # Deterministic random adjacency (adj[dst, src]) with self-loops so every
    # node has at least one incoming edge (softmax is well-defined).
    adj = (jax.random.uniform(k_adj, (N, N)) < 0.3).astype(jnp.float32)
    adj = jnp.maximum(adj, jnp.eye(N, dtype=jnp.float32))

    h = gat_forward(hn, wfc, attn_w, adj)
    jax.block_until_ready(h)

    h_ref = gat_reference(hn, wfc, attn_w, adj)
    assert h.shape == (N, out_dim)
    # Tolerance accounts for the approximate EUP reciprocal in the kernel softmax
    # (bf16 rounding of the matmul operands is mirrored by the reference).
    assert jnp.allclose(h, h_ref, atol=1e-2, rtol=1e-2), "mismatch vs reference"

    print("KERNEL_OK")
</pallas_src>

<mosaic_0001>
module attributes {stable_mosaic.version = 11 : i64} {
  func.func @gat_project_kernel(%arg0: i32, %arg1: memref<64x16xf32, #tpu.memory_space<vmem>>, %arg2: memref<16x34xbf16, #tpu.memory_space<vmem>>, %arg3: memref<64x32xbf16, #tpu.memory_space<vmem>>, %arg4: memref<1x64xf32, #tpu.memory_space<vmem>>, %arg5: memref<64x1xf32, #tpu.memory_space<vmem>>) attributes {dimension_semantics = [#tpu.dimension_semantics<parallel>], iteration_bounds = array<i64: 1>, scalar_prefetch = 0 : i64, scratch_operands = 0 : i64, tpu.core_type = #tpu.core_type<tc>, window_params = [{transform_indices = @transform_0, window_bounds = array<i64: 64, 16>}, {pipeline_mode = #tpu.pipeline_mode<synchronous>, transform_indices = @transform_1, window_bounds = array<i64: 16, 34>}, {transform_indices = @transform_2, window_bounds = array<i64: 64, 32>}, {transform_indices = @transform_3, window_bounds = array<i64: 1, 64>}, {transform_indices = @transform_4, window_bounds = array<i64: 64, 1>}]} {
    %c0 = arith.constant 0 : index
    %c0_0 = arith.constant 0 : index
    %0 = vector.load %arg1[%c0, %c0_0] : memref<64x16xf32, #tpu.memory_space<vmem>>, vector<64x16xf32>
    %1 = arith.truncf %0 : vector<64x16xf32> to vector<64x16xbf16>
    %c0_1 = arith.constant 0 : index
    %c0_2 = arith.constant 0 : index
    %2 = vector.load %arg2[%c0_1, %c0_2] : memref<16x34xbf16, #tpu.memory_space<vmem>>, vector<16x34xbf16>
    %cst = arith.constant dense<0.000000e+00> : vector<64x34xf32>
    %3 = tpu.matmul %1, %2, %cst {dimension_numbers = #tpu.dot_dimension_numbers<[1], [0], [0], [1], [0, 0, 1, 1], [], []>} : vector<64x16xbf16>, vector<16x34xbf16>, vector<64x34xf32> -> vector<64x34xf32>
    %4 = vector.extract_strided_slice %3 {offsets = [0, 0], sizes = [64, 32], strides = [1, 1]} : vector<64x34xf32> to vector<64x32xf32>
    %5 = arith.truncf %4 : vector<64x32xf32> to vector<64x32xbf16>
    %c0_3 = arith.constant 0 : index
    %c0_4 = arith.constant 0 : index
    %6 = vector.load %arg3[%c0_3, %c0_4] : memref<64x32xbf16, #tpu.memory_space<vmem>>, vector<64x32xbf16>
    tpu.vector_store %arg3[%c0_3, %c0_4], %5 {strides = array<i32>} : memref<64x32xbf16, #tpu.memory_space<vmem>>, vector<64x32xbf16>,
    %7 = vector.extract_strided_slice %3 {offsets = [0, 32], sizes = [64, 1], strides = [1, 1]} : vector<64x34xf32> to vector<64x1xf32>
    %8 = tpu.transpose %7, [1, 0] : vector<64x1xf32> -> vector<1x64xf32>
    %c0_5 = arith.constant 0 : index
    %c0_6 = arith.constant 0 : index
    %9 = vector.load %arg4[%c0_5, %c0_6] : memref<1x64xf32, #tpu.memory_space<vmem>>, vector<1x64xf32>
    tpu.vector_store %arg4[%c0_5, %c0_6], %8 {strides = array<i32>} : memref<1x64xf32, #tpu.memory_space<vmem>>, vector<1x64xf32>,
    %10 = vector.extract_strided_slice %3 {offsets = [0, 33], sizes = [64, 1], strides = [1, 1]} : vector<64x34xf32> to vector<64x1xf32>
    %c0_7 = arith.constant 0 : index
    %c0_8 = arith.constant 0 : index
    %11 = vector.load %arg5[%c0_7, %c0_8] : memref<64x1xf32, #tpu.memory_space<vmem>>, vector<64x1xf32>
    tpu.vector_store %arg5[%c0_7, %c0_8], %10 {strides = array<i32>} : memref<64x1xf32, #tpu.memory_space<vmem>>, vector<64x1xf32>,
    return
  }
  func.func @transform_0(%arg0: i32) -> (i32, i32) {
    %c0_i32 = arith.constant 0 : i32
    %c0_i32_0 = arith.constant 0 : i32
    return %arg0, %c0_i32 : i32, i32
  }
  func.func @transform_1(%arg0: i32) -> (i32, i32) {
    %c0_i32 = arith.constant 0 : i32
    %c0_i32_0 = arith.constant 0 : i32
    %c0_i32_1 = arith.constant 0 : i32
    return %c0_i32, %c0_i32_0 : i32, i32
  }
  func.func @transform_2(%arg0: i32) -> (i32, i32) {
    %c0_i32 = arith.constant 0 : i32
    %c0_i32_0 = arith.constant 0 : i32
    return %arg0, %c0_i32 : i32, i32
  }
  func.func @transform_3(%arg0: i32) -> (i32, i32) {
    %c0_i32 = arith.constant 0 : i32
    %c0_i32_0 = arith.constant 0 : i32
    return %c0_i32, %arg0 : i32, i32
  }
  func.func @transform_4(%arg0: i32) -> (i32, i32) {
    %c0_i32 = arith.constant 0 : i32
    %c0_i32_0 = arith.constant 0 : i32
    return %arg0, %c0_i32 : i32, i32
  }
}

</mosaic_0001>

<bundles_post_ra>
// kernel: tpu_custom_call.1
= control target key start
LH: loop header
LB: loop body
LE: loop exit
PB: predicated region body
PF: predicated region fallthrough
CT: control target
= control target key end

     0   :  { %vm36_vm0 = vcmask 130048   ;;  %s478_s0 = inlined_call_operand.vmem [shape: f32[64,16], index: 0, kind: input, shape index: {}]   ;;  %s479_s1 = inlined_call_operand.vmem [shape: bf16[16,34], index: 1, kind: input, shape index: {}]   ;;  %s480_s2 = inlined_call_operand.vmem [shape: bf16[64,32], index: 2, kind: output, shape index: {0}]   ;;  %s481_s3 = inlined_call_operand.hbm [shape: f32[1,64], index: 3, kind: output, shape index: {1}]   ;;  %s482_s4 = inlined_call_operand.vmem [shape: f32[64,1], index: 4, kind: output, shape index: {2}]  }
   0x1   :  { %v318_v0 = vld [vmem:[%s479_s1] sm:$0xff]   ;;  %v17_v2 = vld [vmem:[%s478_s0 + $0x8] sm:$0xff]  ;;  %v18_v3 = vld [vmem:[%s478_s0 + $0x10] sm:$0xff] }
   0x2   :  { %v16_v1 = vld [vmem:[%s478_s0] sm:$0xff]  ;;  %302 = vmatprep.subr.bf16.mxu0 %v318_v0  ;;  %v19_v5 = vld [vmem:[%s478_s0 + $0x18] sm:$0xff]  ;;  %312 = vmatprep.subr.bf16.mxu1 %v318_v0  ;;  %v21_v7 = vld [vmem:[%s478_s0 + $0x28] sm:$0xff] }
   0x3   :  { %v24_v4 = vpack.c.bf16 %v17_v2, %v16_v1  ;;  %v20_v6 = vld [vmem:[%s478_s0 + $0x20] sm:$0xff]  ;;  %303 = vmatpush3.bf16.msra.mxu0 %v318_v0  ;;  %v25_v8 = vpack.c.bf16 %v19_v5, %v18_v3  ;;  %313 = vmatpush3.bf16.msra.mxu1 %v318_v0  ;;  %v22_v10 = vld [vmem:[%s478_s0 + $0x30] sm:$0xff]  ;;  %v23_v11 = vld [vmem:[%s478_s0 + $0x38] sm:$0xff] }
   0x4   :  { %v26_v9 = vpack.c.bf16 %v21_v7, %v20_v6 }
   0x5   :  { %10 = vsyncpa [#allocation3], 0  ;;  %304 = vmatprep.mubr.msk.bf16.mxu0 %vm36_vm0, %v24_v4  ;;  %v27_v12 = vpack.c.bf16 %v23_v11, %v22_v10  ;;  %vm146_vm1 = vcmask 257024   ;;  %s343_s6 = smov 96   ;;  %s344_s22 = smov 95   ;;  %vm245_vm2 = vcmask 7168  }
   0x6   :  { %308 = vmatprep.mubr.msk.bf16.mxu1 %vm36_vm0, %v26_v9  ;;  %305 = vmatmul.mubr.msk.bf16.vlgmr.msra.gmra.mrb[0].mxu0 %vm36_vm0, %v25_v8  ;;  %s345_s10 = smov [#allocation2]   ;;  %vm219_vm3 = vcmask 516096  }
   0x7   :  { %309 = vmatmul.mubr.msk.bf16.vlgmr.msra.gmra.mrb[0].mxu1 %vm36_vm0, %v27_v12  ;;  %s262_s11 = sshll.u32 %s345_s10, 4  ;;  %s263_s11 = int_to_ptr.vmem [resolvable:$true] %s262_s11 }
   0x8   :  { %s319_s12 = scalar_lea.vmem %s263_s11, 16  ;;  %s323_s13 = scalar_lea.vmem %s263_s11, 32 }
   0x9   :  { %p320_p0 = scmp.ne.s32.totalorder %s263_s11, %s319_s12  ;;  %p324_p1 = scmp.lt.s32.totalorder %s263_s11, %s263_s11 }
   0xa   :  { %p325_p2 = scmp.lt.s32.totalorder %s323_s13, %s319_s12 }
   0xc   :  { %p326_p3 = por %p325_p2, %p324_p1 }
   0xe   :  { %p327_p4 = pnand %p326_p3, %p320_p0 }
  0xd9   :  { %v306_v13 = vpop.f32.mrb[0].mxu0 }
  0xda   :  { %v310_v14 = vpop.f32.mrb[0].mxu1  ;;  %v291_v15 = vpack.c.bf16 %v306_v13, %v306_v13  ;;  %167 = vrot.lane.b32.xlu1 %v306_v13, %s343_s6  ;;  %v83_v16 = vpop.f32.mrb[1].mxu0 }
  0xdb   :  { %v295_v17 = vpack.c.bf16 %v310_v14, %v310_v14  ;;  %v99_v18 = vpop.f32.mrb[1].mxu1  ;;  %v289_v19 = vpack.c.bf16 %v83_v16, %v83_v16  ;;  %163 = vrot.lane.b32.xlu0 %v83_v16, %s343_s6  ;;  %v307_v20 = vpop.f32.mrb[2].mxu0 }
  0xdc   :  { %v293_v21 = vpack.c.bf16 %v99_v18, %v99_v18  ;;  %v311_v22 = vpop.f32.mrb[2].mxu1  ;;  %149 = vst.msk [vmem:[%s480_s2 + $0x8] sm:$0xf] %vm146_vm1, %v291_v15  ;;  %v292_v23 = vpack.c.bf16 %v307_v20, %v307_v20  ;;  %v86_v24 = vpop.f32.mrb[3].mxu0 }
  0xdd   :  { %153 = vst.msk [vmem:[%s480_s2 + $0x18] sm:$0xf] %vm146_vm1, %v295_v17  ;;  %v296_v25 = vpack.c.bf16 %v311_v22, %v311_v22  ;;  %v102_v26 = vpop.f32.mrb[3].mxu1  ;;  %147 = vst.msk [vmem:[%s480_s2] sm:$0xf] %vm146_vm1, %v289_v19  ;;  %v290_v27 = vpack.c.bf16 %v86_v24, %v86_v24 }
  0xde   :  { %151 = vst.msk [vmem:[%s480_s2 + $0x10] sm:$0xf] %vm146_vm1, %v293_v21  ;;  %v294_v28 = vpack.c.bf16 %v102_v26, %v102_v26  ;;  %150 = vst.msk [vmem:[%s480_s2 + $0xc] sm:$0xf] %vm146_vm1, %v292_v23  ;;  %169 = vrot.lane.b32.xlu1 %v307_v20, %s343_s6 }
  0xdf   :  { %154 = vst.msk [vmem:[%s480_s2 + $0x1c] sm:$0xf] %vm146_vm1, %v296_v25  ;;  %148 = vst.msk [vmem:[%s480_s2 + $0x4] sm:$0xf] %vm146_vm1, %v290_v27  ;;  %165 = vrot.lane.b32.xlu0 %v86_v24, %s343_s6 }
  0xe0   :  { %152 = vst.msk [vmem:[%s480_s2 + $0x14] sm:$0xf] %vm146_vm1, %v294_v28 }
  0xe2   :  { %173 = vrot.lane.b32.xlu1 %v102_v26, %s343_s6 }
  0xe3   :  { %171 = vrot.lane.b32.xlu0 %v99_v18, %s343_s6 }
  0xe6   :  { %177 = vrot.lane.b32.xlu1 %v311_v22, %s343_s6 }
  0xe7   :  { %175 = vrot.lane.b32.xlu0 %v310_v14, %s343_s6 }
  0xea   :  { %221 = vrot.lane.b32.xlu1 %v83_v16, %s344_s22 }
  0xee   :  { %223 = vrot.lane.b32.xlu1 %v86_v24, %s344_s22 }
  0xf2   :  { %225 = vrot.lane.b32.xlu1 %v306_v13, %s344_s22 }
  0xf6   :  { %227 = vrot.lane.b32.xlu1 %v307_v20, %s344_s22 }
  0xfa   :  { %229 = vrot.lane.b32.xlu1 %v99_v18, %s344_s22 }
  0xfe   :  { %231 = vrot.lane.b32.xlu1 %v102_v26, %s344_s22 }
 0x102   :  { %233 = vrot.lane.b32.xlu1 %v310_v14, %s344_s22 }
 0x106   :  { %235 = vrot.lane.b32.xlu1 %v311_v22, %s344_s22 }
 0x14c   :  { %v168_v29 = vpop.permute.xlu1 %167 }
 0x14d   :  { %v164_v30 = vpop.permute.xlu0 %163 }
 0x14e   :  { %187 = vxpose.xlu0.b32.start [1/8] (short) (narrow) %v164_v30, 8 }
 0x150   :  { %v170_v31 = vpop.permute.xlu1 %169 }
 0x151   :  { %v166_v32 = vpop.permute.xlu0 %165 }
 0x152   :  { %188 = vxpose.xlu0.b32.cont [2/8] (short) (narrow) %v166_v32, 8 }
 0x154   :  { %v174_v33 = vpop.permute.xlu1 %173 }
 0x155   :  { %v172_v36 = vpop.permute.xlu0 %171 }
 0x156   :  { %189 = vxpose.xlu0.b32.cont [3/8] (short) (narrow) %v168_v29, 8 }
 0x158   :  { %v178_v34 = vpop.permute.xlu1 %177 }
 0x159   :  { %v176_v39 = vpop.permute.xlu0 %175 }
 0x15a   :  { %190 = vxpose.xlu0.b32.cont [4/8] (short) (narrow) %v170_v31, 8 }
 0x15c   :  { %v222_v35 = vpop.permute.xlu1 %221 }
 0x15d   :  { %246 = vst.msk [vmem:[%s482_s4] sm:$0xff] %vm245_vm2, %v222_v35 }
 0x15e   :  { %191 = vxpose.xlu0.b32.cont [5/8] (short) (narrow) %v172_v36, 8 }
 0x160   :  { %v224_v37 = vpop.permute.xlu1 %223 }
 0x161   :  { %247 = vst.msk [vmem:[%s482_s4 + $0x8] sm:$0xff] %vm245_vm2, %v224_v37 }
 0x162   :  { %192 = vxpose.xlu0.b32.cont [6/8] (short) (narrow) %v174_v33, 8 }
 0x164   :  { %v226_v38 = vpop.permute.xlu1 %225 }
 0x165   :  { %248 = vst.msk [vmem:[%s482_s4 + $0x10] sm:$0xff] %vm245_vm2, %v226_v38 }
 0x166   :  { %193 = vxpose.xlu0.b32.cont [7/8] (short) (narrow) %v176_v39, 8 }
 0x168   :  { %v228_v40 = vpop.permute.xlu1 %227 }
 0x169   :  { %249 = vst.msk [vmem:[%s482_s4 + $0x18] sm:$0xff] %vm245_vm2, %v228_v40 }
 0x16a   :  { %194 = vxpose.xlu0.b32.end [8/8] (short) (narrow) %v178_v34, 8 }
 0x16c   :  { %v230_v41 = vpop.permute.xlu1 %229 }
 0x16d   :  { %250 = vst.msk [vmem:[%s482_s4 + $0x20] sm:$0xff] %vm245_vm2, %v230_v41 }
 0x170   :  { %v232_v42 = vpop.permute.xlu1 %231 }
 0x171   :  { %251 = vst.msk [vmem:[%s482_s4 + $0x28] sm:$0xff] %vm245_vm2, %v232_v42 }
 0x174   :  { %v234_v43 = vpop.permute.xlu1 %233 }
 0x175   :  { %252 = vst.msk [vmem:[%s482_s4 + $0x30] sm:$0xff] %vm245_vm2, %v234_v43 }
 0x178   :  { %v236_v44 = vpop.permute.xlu1 %235 }
 0x179   :  { %253 = vst.msk [vmem:[%s482_s4 + $0x38] sm:$0xff] %vm245_vm2, %v236_v44 }
 0x1ce   :  { %v203_v45 = vpop.trf.xlu0 }
 0x1cf   :  { %220 = vst.msk [vmem:[#allocation2] sm:$0x1] %vm219_vm3, %v203_v45 }
 0x1d0   :  { %330 = shalt.err (!%p327_p4)
}
 0x1d1   :  { %s331_s16 = scalar_lea.hbm %s481_s3, 16 }
 0x1d2   :  { %p332_p5 = scmp.ne.s32.totalorder %s481_s3, %s331_s16  ;;  %p335_p6 = scmp.lt.u32.totalorder %s331_s16, %s481_s3 }
 0x1d4   :  { %p337_p7 = pnand %p335_p6, %p332_p5 }
 0x1d6   :  { %340 = shalt.err (!%p337_p7)
}
 0x1d7   :  { %265 = dma.vmem_to_hbm [thread:$0]  %s263_s11, 16, %s481_s3, [#allocation3]  }
 0x1d8   :  { %341 = dma.done.wait [#allocation3], 16  }
 0x1d9   :  { %342 = vsyncadd [#allocation3], 4294967280 }
 0x1da   :  { %275 = vsyncpa [#allocation3], 1 }

</bundles_post_ra>
